<compile_context>
chip_gen: v5e
topology: v5e:2x2
jax: 0.10.0
libtpu: 0.0.40
codegen_flags: <defaults>
</compile_context>

<pallas_src>
import numpy as np

import jax
import jax.numpy as jnp
from jax import lax
from jax.experimental import pallas as pl
from jax.experimental.pallas import tpu as pltpu

EPS = 1e-6
_MIXED_NOEXP = 5  # tile has mixed categories but no positive/negative columns
_MIXED = 6        # tile has mixed categories including positive/negative columns


def _preprocess_kernel(tile_cat_ref, cat_ref, x_ref, o_ref):
    tc = tile_cat_ref[pl.program_id(0)]  # scalar (SMEM): category code of this D-tile
    x = x_ref[...]                       # (N, TD) f32
    inv_nm1 = 1.0 / (x.shape[0] - 1)     # unbiased std (ddof=1); N==1 -> inf like torch

    def finish(y):
        # Standardize per column and store -- the ONLY write to o_ref per tile.
        mean = jnp.mean(y, axis=0, keepdims=True)
        centered = y - mean
        var = jnp.sum(centered * centered, axis=0, keepdims=True) * inv_nm1
        o_ref[...] = centered * lax.rsqrt(var)

    # ---- per-tile fast paths: only the needed transform is computed ----
    @pl.when(tc == 0)  # identity
    def _():
        finish(x)

    @pl.when(tc == 1)  # positive: log(exp(x) - 1 + eps)
    def _():
        finish(jnp.log(jnp.exp(x) - 1.0 + EPS))

    @pl.when(tc == 2)  # negative: log(exp(-x) - 1 + eps)
    def _():
        finish(jnp.log(jnp.exp(-x) - 1.0 + EPS))

    @pl.when(tc == 3)  # exponential: log(x + eps)
    def _():
        finish(jnp.log(x + EPS))

    @pl.when(tc == 4)  # bounded: inverse sigmoid with batch-derived bounds
    def _():
        lb = jnp.min(x, axis=0, keepdims=True) - EPS
        ub = jnp.max(x, axis=0, keepdims=True) + EPS
        finish(jnp.log((x - lb) / (ub - x)))

    # ---- mixed-category tiles: merged where-chain, a SINGLE log ----
    def mixed(with_exp):
        cat = cat_ref[...]  # (1, TD) i32, broadcasts over rows
        lb = jnp.min(x, axis=0, keepdims=True) - EPS
        ub = jnp.max(x, axis=0, keepdims=True) + EPS
        arg = jnp.where(cat == 3, x + EPS, 1.0)           # default log(1) = 0
        arg = jnp.where(cat == 4, (x - lb) / (ub - x), arg)
        if with_exp:
            e = jnp.exp(x)                                # shared by cat 1 and 2
            arg = jnp.where(cat == 1, e - 1.0 + EPS, arg)
            arg = jnp.where(cat == 2, 1.0 / e - 1.0 + EPS, arg)
        finish(jnp.where(cat == 0, x, jnp.log(arg)))      # one log for the whole tile

    @pl.when(tc == _MIXED_NOEXP)
    def _():
        mixed(False)

    @pl.when(tc == _MIXED)
    def _():
        mixed(True)


def _vmem_caps():
    """(block budget, scoped vmem limit) in bytes, derived from the chip when possible."""
    cap = None
    try:
        info = pltpu.get_tpu_info()
        cap = getattr(info, "vmem_capacity_bytes", None)
    except Exception:
        cap = None
    if not cap or cap <= 0:
        cap = 64 << 20  # conservative: v7x per-TC physical VMEM
    budget = cap // 2                          # what we let the pipelined blocks use
    limit = min((cap * 3) // 4, 100 << 20)     # scoped VMEM limit, leave headroom
    return int(budget), int(limit)


def _choose_tile_width(N, D, budget_bytes):
    """Largest legal lane-dense tile width that fits the VMEM budget."""
    # Per grid step we hold roughly (in + out, double-buffered) + elementwise
    # temporaries ~= 7 float32 copies of an (N, TD) block.
    per_col_bytes = 7 * N * 4
    max_td = max(int(budget_bytes // per_col_bytes), 128)
    if D <= max_td and D <= 4 * 128:
        return D  # small D: single full-D block (full-extent block is always legal)
    # Tiled case: largest multiple of 128 within budget (never a sub-128 fallback).
    td = max(128, (min(max_td, D) // 128) * 128)
    if D >= 8 * 512:
        # Aim for >= 8 grid steps (pipeline depth + v7x megacore sharding) while
        # keeping tiles >= 512 lanes (measured ~85% of HBM roofline).
        td = min(td, max(512, ((D // 8) // 128) * 128))
    return td


def preprocess(x, cat_codes):
    """x: (N, D) float32; cat_codes: (1, D) int32 category per column."""
    x = jnp.asarray(x, dtype=jnp.float32)
    N, D = x.shape
    cat_np = np.asarray(cat_codes, dtype=np.int32).reshape(1, D)

    budget, vmem_limit = _vmem_caps()
    TD = _choose_tile_width(N, D, budget)
    num_tiles = -(-D // TD)  # ceil-div grid; ragged last tile handled by Pallas

    # Per-tile category code (static, from module config): a tile whose columns
    # are all one category takes the cheap single-transform path in the kernel;
    # mixed tiles without positive/negative columns skip the exp/reciprocal.
    flat = cat_np.reshape(-1)
    tile_cat = np.empty((num_tiles,), dtype=np.int32)
    for t in range(num_tiles):
        seg = flat[t * TD:min((t + 1) * TD, D)]
        if np.all(seg == seg[0]):
            tile_cat[t] = int(seg[0])
        elif np.any((seg == 1) | (seg == 2)):
            tile_cat[t] = _MIXED
        else:
            tile_cat[t] = _MIXED_NOEXP

    grid_spec = pltpu.PrefetchScalarGridSpec(
        num_scalar_prefetch=1,
        grid=(num_tiles,),
        in_specs=[
            pl.BlockSpec((1, TD), lambda i, tcat: (0, i)),   # cat codes
            pl.BlockSpec((N, TD), lambda i, tcat: (0, i)),   # x
        ],
        out_specs=pl.BlockSpec((N, TD), lambda i, tcat: (0, i)),
    )

    return pl.pallas_call(
        _preprocess_kernel,
        out_shape=jax.ShapeDtypeStruct((N, D), jnp.float32),
        grid_spec=grid_spec,
        compiler_params=pltpu.CompilerParams(
            dimension_semantics=("parallel",),  # D-tiles independent -> megacore
            vmem_limit_bytes=vmem_limit,
        ),
    )(jnp.asarray(tile_cat), jnp.asarray(cat_np), x)


def _reference_numpy(x, cat_codes):
    """Float32 numpy reference mirroring the (float32) PyTorch forward."""
    x = np.asarray(x, dtype=np.float32)
    cat = np.asarray(cat_codes).reshape(-1)
    N, D = x.shape
    eps = np.float32(EPS)
    one = np.float32(1.0)
    out = np.zeros_like(x)
    for j in range(D):
        col = x[:, j]
        c = int(cat[j])
        if c == 0:
            out[:, j] = col
        elif c == 1:
            out[:, j] = np.log(np.exp(col) - one + eps)
        elif c == 2:
            out[:, j] = np.log(np.exp(-col) - one + eps)
        elif c == 3:
            out[:, j] = np.log(col + eps)
        else:
            lb = np.float32(col.min()) - eps
            ub = np.float32(col.max()) + eps
            out[:, j] = np.log((col - lb) / (ub - col))
    mean = out.mean(axis=0, dtype=np.float32)
    std = out.std(axis=0, ddof=1, dtype=np.float32)  # torch.std default: unbiased
    return (out - mean) / std


if __name__ == "__main__":
    # Small shapes: batch N=8, D=16 feature columns.
    N, D = 8, 16
    identity_idxs = [0, 1, 2]
    positive_idxs = [3, 4, 5]
    negative_idxs = [6, 7]
    exponential_idxs = [8, 9, 10]
    bounded_idxs = [11, 12, 13, 14, 15]

    cat = np.zeros((1, D), dtype=np.int32)
    cat[0, positive_idxs] = 1
    cat[0, negative_idxs] = 2
    cat[0, exponential_idxs] = 3
    cat[0, bounded_idxs] = 4

    key = jax.random.PRNGKey(0)
    k1, k2 = jax.random.split(key)
    base = jax.random.normal(k1, (N, D), dtype=jnp.float32)
    unif = jax.random.uniform(k2, (N, D), dtype=jnp.float32)

    # Build input with domain-appropriate values per category.
    pos_like = jnp.abs(base) + 0.1
    x = base
    x = x.at[:, jnp.array(positive_idxs)].set(pos_like[:, jnp.array(positive_idxs)])
    x = x.at[:, jnp.array(negative_idxs)].set(-pos_like[:, jnp.array(negative_idxs)])
    x = x.at[:, jnp.array(exponential_idxs)].set(pos_like[:, jnp.array(exponential_idxs)])
    x = x.at[:, jnp.array(bounded_idxs)].set(unif[:, jnp.array(bounded_idxs)])
    x = x.astype(jnp.float32)

    # Mixed-category tile containing positive/negative -> exercises the full
    # merged-log select path with the shared exp.
    out = jax.block_until_ready(preprocess(x, cat))
    ref = _reference_numpy(np.asarray(x), cat)
    np.testing.assert_allclose(np.asarray(out), ref, rtol=1e-3, atol=1e-3)

    # Mixed-category tile WITHOUT positive/negative -> exercises the exp-free
    # mixed path (categories 0, 3, 4 only).
    cat_ne = np.zeros((1, D), dtype=np.int32)
    cat_ne[0, 5:10] = 3
    cat_ne[0, 10:] = 4
    x_ne = base
    x_ne = x_ne.at[:, 5:10].set(pos_like[:, 5:10])
    x_ne = x_ne.at[:, 10:].set(unif[:, 10:])
    x_ne = x_ne.astype(jnp.float32)
    out_ne = jax.block_until_ready(preprocess(x_ne, cat_ne))
    ref_ne = _reference_numpy(np.asarray(x_ne), cat_ne)
    np.testing.assert_allclose(np.asarray(out_ne), ref_ne, rtol=1e-3, atol=1e-3)

    # Uniform-category inputs -> exercise each single-transform fast path.
    for c in range(5):
        cat_u = np.full((1, D), c, dtype=np.int32)
        if c == 0:
            xu = base
        elif c in (1, 3):
            xu = pos_like
        elif c == 2:
            xu = -pos_like
        else:
            xu = unif
        xu = xu.astype(jnp.float32)
        out_u = jax.block_until_ready(preprocess(xu, cat_u))
        ref_u = _reference_numpy(np.asarray(xu), cat_u)
        np.testing.assert_allclose(np.asarray(out_u), ref_u, rtol=1e-3, atol=1e-3)

    print("KERNEL_OK")
</pallas_src>

<mosaic_0001>
module attributes {stable_mosaic.version = 11 : i64} {
  func.func @_preprocess_kernel(%arg0: i32, %arg1: memref<1xi32, #tpu.memory_space<smem>>, %arg2: memref<1x16xi32, #tpu.memory_space<vmem>>, %arg3: memref<8x16xf32, #tpu.memory_space<vmem>>, %arg4: memref<8x16xf32, #tpu.memory_space<vmem>>) attributes {dimension_semantics = [#tpu.dimension_semantics<parallel>], iteration_bounds = array<i64: 1>, scalar_prefetch = 1 : i64, scratch_operands = 0 : i64, tpu.core_type = #tpu.core_type<tc>, window_params = [{transform_indices = @transform_0, window_bounds = array<i64: 1, 16>}, {transform_indices = @transform_1, window_bounds = array<i64: 8, 16>}, {transform_indices = @transform_2, window_bounds = array<i64: 8, 16>}]} {
    %0 = arith.index_cast %arg0 : i32 to index
    %1 = memref.load %arg1[%0] : memref<1xi32, #tpu.memory_space<smem>>
    %c0 = arith.constant 0 : index
    %c0_0 = arith.constant 0 : index
    %2 = vector.load %arg3[%c0, %c0_0] : memref<8x16xf32, #tpu.memory_space<vmem>>, vector<8x16xf32>
    %c0_i32 = arith.constant 0 : i32
    %3 = arith.cmpi eq, %1, %c0_i32 : i32
    %4 = arith.extui %3 : i1 to i32
    %c0_i32_1 = arith.constant 0 : i32
    %5 = arith.cmpi ne, %4, %c0_i32_1 : i32
    scf.if %5 {
      %cst = arith.constant dense<0.000000e+00> : vector<16xf32>
      %24 = vector.multi_reduction <add>, %2, %cst [0] : vector<8x16xf32> to vector<16xf32>
      %25 = vector.shape_cast %24 : vector<16xf32> to vector<1x16xf32>
      %cst_8 = arith.constant 8.000000e+00 : f32
      %26 = vector.broadcast %cst_8 : f32 to vector<1x16xf32>
      %27 = arith.divf %25, %26 : vector<1x16xf32>
      %28 = vector.broadcast %27 : vector<1x16xf32> to vector<8x16xf32>
      %29 = arith.subf %2, %28 : vector<8x16xf32>
      %30 = arith.mulf %29, %29 : vector<8x16xf32>
      %cst_9 = arith.constant dense<0.000000e+00> : vector<16xf32>
      %31 = vector.multi_reduction <add>, %30, %cst_9 [0] : vector<8x16xf32> to vector<16xf32>
      %32 = vector.shape_cast %31 : vector<16xf32> to vector<1x16xf32>
      %cst_10 = arith.constant 0.142857149 : f32
      %33 = vector.broadcast %cst_10 : f32 to vector<1x16xf32>
      %34 = arith.mulf %32, %33 : vector<1x16xf32>
      %35 = math.rsqrt %34 : vector<1x16xf32>
      %36 = vector.broadcast %35 : vector<1x16xf32> to vector<8x16xf32>
      %37 = arith.mulf %29, %36 : vector<8x16xf32>
      %c0_11 = arith.constant 0 : index
      %c0_12 = arith.constant 0 : index
      %38 = vector.load %arg4[%c0_11, %c0_12] : memref<8x16xf32, #tpu.memory_space<vmem>>, vector<8x16xf32>
      tpu.vector_store %arg4[%c0_11, %c0_12], %37 {strides = array<i32>} : memref<8x16xf32, #tpu.memory_space<vmem>>, vector<8x16xf32>,
    } else {
    }
    %c1_i32 = arith.constant 1 : i32
    %6 = arith.cmpi eq, %1, %c1_i32 : i32
    %7 = arith.extui %6 : i1 to i32
    %c0_i32_2 = arith.constant 0 : i32
    %8 = arith.cmpi ne, %7, %c0_i32_2 : i32
    scf.if %8 {
      %24 = math.exp %2 : vector<8x16xf32>
      %cst = arith.constant 1.000000e+00 : f32
      %25 = vector.broadcast %cst : f32 to vector<8x16xf32>
      %26 = arith.subf %24, %25 : vector<8x16xf32>
      %cst_8 = arith.constant 9.99999997E-7 : f32
      %27 = vector.broadcast %cst_8 : f32 to vector<8x16xf32>
      %28 = arith.addf %26, %27 : vector<8x16xf32>
      %29 = math.log %28 : vector<8x16xf32>
      %cst_9 = arith.constant dense<0.000000e+00> : vector<16xf32>
      %30 = vector.multi_reduction <add>, %29, %cst_9 [0] : vector<8x16xf32> to vector<16xf32>
      %31 = vector.shape_cast %30 : vector<16xf32> to vector<1x16xf32>
      %cst_10 = arith.constant 8.000000e+00 : f32
      %32 = vector.broadcast %cst_10 : f32 to vector<1x16xf32>
      %33 = arith.divf %31, %32 : vector<1x16xf32>
      %34 = vector.broadcast %33 : vector<1x16xf32> to vector<8x16xf32>
      %35 = arith.subf %29, %34 : vector<8x16xf32>
      %36 = arith.mulf %35, %35 : vector<8x16xf32>
      %cst_11 = arith.constant dense<0.000000e+00> : vector<16xf32>
      %37 = vector.multi_reduction <add>, %36, %cst_11 [0] : vector<8x16xf32> to vector<16xf32>
      %38 = vector.shape_cast %37 : vector<16xf32> to vector<1x16xf32>
      %cst_12 = arith.constant 0.142857149 : f32
      %39 = vector.broadcast %cst_12 : f32 to vector<1x16xf32>
      %40 = arith.mulf %38, %39 : vector<1x16xf32>
      %41 = math.rsqrt %40 : vector<1x16xf32>
      %42 = vector.broadcast %41 : vector<1x16xf32> to vector<8x16xf32>
      %43 = arith.mulf %35, %42 : vector<8x16xf32>
      %c0_13 = arith.constant 0 : index
      %c0_14 = arith.constant 0 : index
      %44 = vector.load %arg4[%c0_13, %c0_14] : memref<8x16xf32, #tpu.memory_space<vmem>>, vector<8x16xf32>
      tpu.vector_store %arg4[%c0_13, %c0_14], %43 {strides = array<i32>} : memref<8x16xf32, #tpu.memory_space<vmem>>, vector<8x16xf32>,
    } else {
    }
    %c2_i32 = arith.constant 2 : i32
    %9 = arith.cmpi eq, %1, %c2_i32 : i32
    %10 = arith.extui %9 : i1 to i32
    %c0_i32_3 = arith.constant 0 : i32
    %11 = arith.cmpi ne, %10, %c0_i32_3 : i32
    scf.if %11 {
      %cst = arith.constant 0.000000e+00 : f32
      %24 = vector.broadcast %cst : f32 to vector<8x16xf32>
      %25 = arith.subf %24, %2 : vector<8x16xf32>
      %26 = math.exp %25 : vector<8x16xf32>
      %cst_8 = arith.constant 1.000000e+00 : f32
      %27 = vector.broadcast %cst_8 : f32 to vector<8x16xf32>
      %28 = arith.subf %26, %27 : vector<8x16xf32>
      %cst_9 = arith.constant 9.99999997E-7 : f32
      %29 = vector.broadcast %cst_9 : f32 to vector<8x16xf32>
      %30 = arith.addf %28, %29 : vector<8x16xf32>
      %31 = math.log %30 : vector<8x16xf32>
      %cst_10 = arith.constant dense<0.000000e+00> : vector<16xf32>
      %32 = vector.multi_reduction <add>, %31, %cst_10 [0] : vector<8x16xf32> to vector<16xf32>
      %33 = vector.shape_cast %32 : vector<16xf32> to vector<1x16xf32>
      %cst_11 = arith.constant 8.000000e+00 : f32
      %34 = vector.broadcast %cst_11 : f32 to vector<1x16xf32>
      %35 = arith.divf %33, %34 : vector<1x16xf32>
      %36 = vector.broadcast %35 : vector<1x16xf32> to vector<8x16xf32>
      %37 = arith.subf %31, %36 : vector<8x16xf32>
      %38 = arith.mulf %37, %37 : vector<8x16xf32>
      %cst_12 = arith.constant dense<0.000000e+00> : vector<16xf32>
      %39 = vector.multi_reduction <add>, %38, %cst_12 [0] : vector<8x16xf32> to vector<16xf32>
      %40 = vector.shape_cast %39 : vector<16xf32> to vector<1x16xf32>
      %cst_13 = arith.constant 0.142857149 : f32
      %41 = vector.broadcast %cst_13 : f32 to vector<1x16xf32>
      %42 = arith.mulf %40, %41 : vector<1x16xf32>
      %43 = math.rsqrt %42 : vector<1x16xf32>
      %44 = vector.broadcast %43 : vector<1x16xf32> to vector<8x16xf32>
      %45 = arith.mulf %37, %44 : vector<8x16xf32>
      %c0_14 = arith.constant 0 : index
      %c0_15 = arith.constant 0 : index
      %46 = vector.load %arg4[%c0_14, %c0_15] : memref<8x16xf32, #tpu.memory_space<vmem>>, vector<8x16xf32>
      tpu.vector_store %arg4[%c0_14, %c0_15], %45 {strides = array<i32>} : memref<8x16xf32, #tpu.memory_space<vmem>>, vector<8x16xf32>,
    } else {
    }
    %c3_i32 = arith.constant 3 : i32
    %12 = arith.cmpi eq, %1, %c3_i32 : i32
    %13 = arith.extui %12 : i1 to i32
    %c0_i32_4 = arith.constant 0 : i32
    %14 = arith.cmpi ne, %13, %c0_i32_4 : i32
    scf.if %14 {
      %cst = arith.constant 9.99999997E-7 : f32
      %24 = vector.broadcast %cst : f32 to vector<8x16xf32>
      %25 = arith.addf %2, %24 : vector<8x16xf32>
      %26 = math.log %25 : vector<8x16xf32>
      %cst_8 = arith.constant dense<0.000000e+00> : vector<16xf32>
      %27 = vector.multi_reduction <add>, %26, %cst_8 [0] : vector<8x16xf32> to vector<16xf32>
      %28 = vector.shape_cast %27 : vector<16xf32> to vector<1x16xf32>
      %cst_9 = arith.constant 8.000000e+00 : f32
      %29 = vector.broadcast %cst_9 : f32 to vector<1x16xf32>
      %30 = arith.divf %28, %29 : vector<1x16xf32>
      %31 = vector.broadcast %30 : vector<1x16xf32> to vector<8x16xf32>
      %32 = arith.subf %26, %31 : vector<8x16xf32>
      %33 = arith.mulf %32, %32 : vector<8x16xf32>
      %cst_10 = arith.constant dense<0.000000e+00> : vector<16xf32>
      %34 = vector.multi_reduction <add>, %33, %cst_10 [0] : vector<8x16xf32> to vector<16xf32>
      %35 = vector.shape_cast %34 : vector<16xf32> to vector<1x16xf32>
      %cst_11 = arith.constant 0.142857149 : f32
      %36 = vector.broadcast %cst_11 : f32 to vector<1x16xf32>
      %37 = arith.mulf %35, %36 : vector<1x16xf32>
      %38 = math.rsqrt %37 : vector<1x16xf32>
      %39 = vector.broadcast %38 : vector<1x16xf32> to vector<8x16xf32>
      %40 = arith.mulf %32, %39 : vector<8x16xf32>
      %c0_12 = arith.constant 0 : index
      %c0_13 = arith.constant 0 : index
      %41 = vector.load %arg4[%c0_12, %c0_13] : memref<8x16xf32, #tpu.memory_space<vmem>>, vector<8x16xf32>
      tpu.vector_store %arg4[%c0_12, %c0_13], %40 {strides = array<i32>} : memref<8x16xf32, #tpu.memory_space<vmem>>, vector<8x16xf32>,
    } else {
    }
    %c4_i32 = arith.constant 4 : i32
    %15 = arith.cmpi eq, %1, %c4_i32 : i32
    %16 = arith.extui %15 : i1 to i32
    %c0_i32_5 = arith.constant 0 : i32
    %17 = arith.cmpi ne, %16, %c0_i32_5 : i32
    scf.if %17 {
      %cst = arith.constant dense<0x7F800000> : vector<16xf32>
      %24 = vector.multi_reduction <minimumf>, %2, %cst [0] : vector<8x16xf32> to vector<16xf32>
      %25 = vector.shape_cast %24 : vector<16xf32> to vector<1x16xf32>
      %cst_8 = arith.constant 9.99999997E-7 : f32
      %26 = vector.broadcast %cst_8 : f32 to vector<1x16xf32>
      %27 = arith.subf %25, %26 : vector<1x16xf32>
      %cst_9 = arith.constant dense<0xFF800000> : vector<16xf32>
      %28 = vector.multi_reduction <maximumf>, %2, %cst_9 [0] : vector<8x16xf32> to vector<16xf32>
      %29 = vector.shape_cast %28 : vector<16xf32> to vector<1x16xf32>
      %cst_10 = arith.constant 9.99999997E-7 : f32
      %30 = vector.broadcast %cst_10 : f32 to vector<1x16xf32>
      %31 = arith.addf %29, %30 : vector<1x16xf32>
      %32 = vector.broadcast %27 : vector<1x16xf32> to vector<8x16xf32>
      %33 = arith.subf %2, %32 : vector<8x16xf32>
      %34 = vector.broadcast %31 : vector<1x16xf32> to vector<8x16xf32>
      %35 = arith.subf %34, %2 : vector<8x16xf32>
      %36 = arith.divf %33, %35 : vector<8x16xf32>
      %37 = math.log %36 : vector<8x16xf32>
      %cst_11 = arith.constant dense<0.000000e+00> : vector<16xf32>
      %38 = vector.multi_reduction <add>, %37, %cst_11 [0] : vector<8x16xf32> to vector<16xf32>
      %39 = vector.shape_cast %38 : vector<16xf32> to vector<1x16xf32>
      %cst_12 = arith.constant 8.000000e+00 : f32
      %40 = vector.broadcast %cst_12 : f32 to vector<1x16xf32>
      %41 = arith.divf %39, %40 : vector<1x16xf32>
      %42 = vector.broadcast %41 : vector<1x16xf32> to vector<8x16xf32>
      %43 = arith.subf %37, %42 : vector<8x16xf32>
      %44 = arith.mulf %43, %43 : vector<8x16xf32>
      %cst_13 = arith.constant dense<0.000000e+00> : vector<16xf32>
      %45 = vector.multi_reduction <add>, %44, %cst_13 [0] : vector<8x16xf32> to vector<16xf32>
      %46 = vector.shape_cast %45 : vector<16xf32> to vector<1x16xf32>
      %cst_14 = arith.constant 0.142857149 : f32
      %47 = vector.broadcast %cst_14 : f32 to vector<1x16xf32>
      %48 = arith.mulf %46, %47 : vector<1x16xf32>
      %49 = math.rsqrt %48 : vector<1x16xf32>
      %50 = vector.broadcast %49 : vector<1x16xf32> to vector<8x16xf32>
      %51 = arith.mulf %43, %50 : vector<8x16xf32>
      %c0_15 = arith.constant 0 : index
      %c0_16 = arith.constant 0 : index
      %52 = vector.load %arg4[%c0_15, %c0_16] : memref<8x16xf32, #tpu.memory_space<vmem>>, vector<8x16xf32>
      tpu.vector_store %arg4[%c0_15, %c0_16], %51 {strides = array<i32>} : memref<8x16xf32, #tpu.memory_space<vmem>>, vector<8x16xf32>,
    } else {
    }
    %c5_i32 = arith.constant 5 : i32
    %18 = arith.cmpi eq, %1, %c5_i32 : i32
    %19 = arith.extui %18 : i1 to i32
    %c0_i32_6 = arith.constant 0 : i32
    %20 = arith.cmpi ne, %19, %c0_i32_6 : i32
    scf.if %20 {
      %c0_8 = arith.constant 0 : index
      %c0_9 = arith.constant 0 : index
      %24 = vector.load %arg2[%c0_8, %c0_9] : memref<1x16xi32, #tpu.memory_space<vmem>>, vector<1x16xi32>
      %cst = arith.constant dense<0x7F800000> : vector<16xf32>
      %25 = vector.multi_reduction <minimumf>, %2, %cst [0] : vector<8x16xf32> to vector<16xf32>
      %26 = vector.shape_cast %25 : vector<16xf32> to vector<1x16xf32>
      %cst_10 = arith.constant 9.99999997E-7 : f32
      %27 = vector.broadcast %cst_10 : f32 to vector<1x16xf32>
      %28 = arith.subf %26, %27 : vector<1x16xf32>
      %cst_11 = arith.constant dense<0xFF800000> : vector<16xf32>
      %29 = vector.multi_reduction <maximumf>, %2, %cst_11 [0] : vector<8x16xf32> to vector<16xf32>
      %30 = vector.shape_cast %29 : vector<16xf32> to vector<1x16xf32>
      %cst_12 = arith.constant 9.99999997E-7 : f32
      %31 = vector.broadcast %cst_12 : f32 to vector<1x16xf32>
      %32 = arith.addf %30, %31 : vector<1x16xf32>
      %c3_i32_13 = arith.constant 3 : i32
      %33 = vector.broadcast %c3_i32_13 : i32 to vector<1x16xi32>
      %34 = arith.cmpi eq, %24, %33 : vector<1x16xi32>
      %cst_14 = arith.constant 9.99999997E-7 : f32
      %35 = vector.broadcast %cst_14 : f32 to vector<8x16xf32>
      %36 = arith.addf %2, %35 : vector<8x16xf32>
      %cst_15 = arith.constant 1.000000e+00 : f32
      %37 = vector.shape_cast %34 : vector<1x16xi1> to vector<1x16xi1>
      %38 = vector.broadcast %37 : vector<1x16xi1> to vector<8x16xi1>
      %39 = vector.broadcast %cst_15 : f32 to vector<8x16xf32>
      %40 = arith.select %38, %36, %39 : vector<8x16xi1>, vector<8x16xf32>
      %c4_i32_16 = arith.constant 4 : i32
      %41 = vector.broadcast %c4_i32_16 : i32 to vector<1x16xi32>
      %42 = arith.cmpi eq, %24, %41 : vector<1x16xi32>
      %43 = vector.broadcast %28 : vector<1x16xf32> to vector<8x16xf32>
      %44 = arith.subf %2, %43 : vector<8x16xf32>
      %45 = vector.broadcast %32 : vector<1x16xf32> to vector<8x16xf32>
      %46 = arith.subf %45, %2 : vector<8x16xf32>
      %47 = arith.divf %44, %46 : vector<8x16xf32>
      %48 = vector.shape_cast %42 : vector<1x16xi1> to vector<1x16xi1>
      %49 = vector.broadcast %48 : vector<1x16xi1> to vector<8x16xi1>
      %50 = arith.select %49, %47, %40 : vector<8x16xi1>, vector<8x16xf32>
      %c0_i32_17 = arith.constant 0 : i32
      %51 = vector.broadcast %c0_i32_17 : i32 to vector<1x16xi32>
      %52 = arith.cmpi eq, %24, %51 : vector<1x16xi32>
      %53 = math.log %50 : vector<8x16xf32>
      %54 = vector.shape_cast %52 : vector<1x16xi1> to vector<1x16xi1>
      %55 = vector.broadcast %54 : vector<1x16xi1> to vector<8x16xi1>
      %56 = arith.select %55, %2, %53 : vector<8x16xi1>, vector<8x16xf32>
      %cst_18 = arith.constant dense<0.000000e+00> : vector<16xf32>
      %57 = vector.multi_reduction <add>, %56, %cst_18 [0] : vector<8x16xf32> to vector<16xf32>
      %58 = vector.shape_cast %57 : vector<16xf32> to vector<1x16xf32>
      %cst_19 = arith.constant 8.000000e+00 : f32
      %59 = vector.broadcast %cst_19 : f32 to vector<1x16xf32>
      %60 = arith.divf %58, %59 : vector<1x16xf32>
      %61 = vector.broadcast %60 : vector<1x16xf32> to vector<8x16xf32>
      %62 = arith.subf %56, %61 : vector<8x16xf32>
      %63 = arith.mulf %62, %62 : vector<8x16xf32>
      %cst_20 = arith.constant dense<0.000000e+00> : vector<16xf32>
      %64 = vector.multi_reduction <add>, %63, %cst_20 [0] : vector<8x16xf32> to vector<16xf32>
      %65 = vector.shape_cast %64 : vector<16xf32> to vector<1x16xf32>
      %cst_21 = arith.constant 0.142857149 : f32
      %66 = vector.broadcast %cst_21 : f32 to vector<1x16xf32>
      %67 = arith.mulf %65, %66 : vector<1x16xf32>
      %68 = math.rsqrt %67 : vector<1x16xf32>
      %69 = vector.broadcast %68 : vector<1x16xf32> to vector<8x16xf32>
      %70 = arith.mulf %62, %69 : vector<8x16xf32>
      %c0_22 = arith.constant 0 : index
      %c0_23 = arith.constant 0 : index
      %71 = vector.load %arg4[%c0_22, %c0_23] : memref<8x16xf32, #tpu.memory_space<vmem>>, vector<8x16xf32>
      tpu.vector_store %arg4[%c0_22, %c0_23], %70 {strides = array<i32>} : memref<8x16xf32, #tpu.memory_space<vmem>>, vector<8x16xf32>,
    } else {
    }
    %c6_i32 = arith.constant 6 : i32
    %21 = arith.cmpi eq, %1, %c6_i32 : i32
    %22 = arith.extui %21 : i1 to i32
    %c0_i32_7 = arith.constant 0 : i32
    %23 = arith.cmpi ne, %22, %c0_i32_7 : i32
    scf.if %23 {
      %c0_8 = arith.constant 0 : index
      %c0_9 = arith.constant 0 : index
      %24 = vector.load %arg2[%c0_8, %c0_9] : memref<1x16xi32, #tpu.memory_space<vmem>>, vector<1x16xi32>
      %cst = arith.constant dense<0x7F800000> : vector<16xf32>
      %25 = vector.multi_reduction <minimumf>, %2, %cst [0] : vector<8x16xf32> to vector<16xf32>
      %26 = vector.shape_cast %25 : vector<16xf32> to vector<1x16xf32>
      %cst_10 = arith.constant 9.99999997E-7 : f32
      %27 = vector.broadcast %cst_10 : f32 to vector<1x16xf32>
      %28 = arith.subf %26, %27 : vector<1x16xf32>
      %cst_11 = arith.constant dense<0xFF800000> : vector<16xf32>
      %29 = vector.multi_reduction <maximumf>, %2, %cst_11 [0] : vector<8x16xf32> to vector<16xf32>
      %30 = vector.shape_cast %29 : vector<16xf32> to vector<1x16xf32>
      %cst_12 = arith.constant 9.99999997E-7 : f32
      %31 = vector.broadcast %cst_12 : f32 to vector<1x16xf32>
      %32 = arith.addf %30, %31 : vector<1x16xf32>
      %c3_i32_13 = arith.constant 3 : i32
      %33 = vector.broadcast %c3_i32_13 : i32 to vector<1x16xi32>
      %34 = arith.cmpi eq, %24, %33 : vector<1x16xi32>
      %cst_14 = arith.constant 9.99999997E-7 : f32
      %35 = vector.broadcast %cst_14 : f32 to vector<8x16xf32>
      %36 = arith.addf %2, %35 : vector<8x16xf32>
      %cst_15 = arith.constant 1.000000e+00 : f32
      %37 = vector.shape_cast %34 : vector<1x16xi1> to vector<1x16xi1>
      %38 = vector.broadcast %37 : vector<1x16xi1> to vector<8x16xi1>
      %39 = vector.broadcast %cst_15 : f32 to vector<8x16xf32>
      %40 = arith.select %38, %36, %39 : vector<8x16xi1>, vector<8x16xf32>
      %c4_i32_16 = arith.constant 4 : i32
      %41 = vector.broadcast %c4_i32_16 : i32 to vector<1x16xi32>
      %42 = arith.cmpi eq, %24, %41 : vector<1x16xi32>
      %43 = vector.broadcast %28 : vector<1x16xf32> to vector<8x16xf32>
      %44 = arith.subf %2, %43 : vector<8x16xf32>
      %45 = vector.broadcast %32 : vector<1x16xf32> to vector<8x16xf32>
      %46 = arith.subf %45, %2 : vector<8x16xf32>
      %47 = arith.divf %44, %46 : vector<8x16xf32>
      %48 = vector.shape_cast %42 : vector<1x16xi1> to vector<1x16xi1>
      %49 = vector.broadcast %48 : vector<1x16xi1> to vector<8x16xi1>
      %50 = arith.select %49, %47, %40 : vector<8x16xi1>, vector<8x16xf32>
      %51 = math.exp %2 : vector<8x16xf32>
      %c1_i32_17 = arith.constant 1 : i32
      %52 = vector.broadcast %c1_i32_17 : i32 to vector<1x16xi32>
      %53 = arith.cmpi eq, %24, %52 : vector<1x16xi32>
      %cst_18 = arith.constant 1.000000e+00 : f32
      %54 = vector.broadcast %cst_18 : f32 to vector<8x16xf32>
      %55 = arith.subf %51, %54 : vector<8x16xf32>
      %cst_19 = arith.constant 9.99999997E-7 : f32
      %56 = vector.broadcast %cst_19 : f32 to vector<8x16xf32>
      %57 = arith.addf %55, %56 : vector<8x16xf32>
      %58 = vector.shape_cast %53 : vector<1x16xi1> to vector<1x16xi1>
      %59 = vector.broadcast %58 : vector<1x16xi1> to vector<8x16xi1>
      %60 = arith.select %59, %57, %50 : vector<8x16xi1>, vector<8x16xf32>
      %c2_i32_20 = arith.constant 2 : i32
      %61 = vector.broadcast %c2_i32_20 : i32 to vector<1x16xi32>
      %62 = arith.cmpi eq, %24, %61 : vector<1x16xi32>
      %cst_21 = arith.constant 1.000000e+00 : f32
      %63 = vector.broadcast %cst_21 : f32 to vector<8x16xf32>
      %64 = arith.divf %63, %51 : vector<8x16xf32>
      %cst_22 = arith.constant 1.000000e+00 : f32
      %65 = vector.broadcast %cst_22 : f32 to vector<8x16xf32>
      %66 = arith.subf %64, %65 : vector<8x16xf32>
      %cst_23 = arith.constant 9.99999997E-7 : f32
      %67 = vector.broadcast %cst_23 : f32 to vector<8x16xf32>
      %68 = arith.addf %66, %67 : vector<8x16xf32>
      %69 = vector.shape_cast %62 : vector<1x16xi1> to vector<1x16xi1>
      %70 = vector.broadcast %69 : vector<1x16xi1> to vector<8x16xi1>
      %71 = arith.select %70, %68, %60 : vector<8x16xi1>, vector<8x16xf32>
      %c0_i32_24 = arith.constant 0 : i32
      %72 = vector.broadcast %c0_i32_24 : i32 to vector<1x16xi32>
      %73 = arith.cmpi eq, %24, %72 : vector<1x16xi32>
      %74 = math.log %71 : vector<8x16xf32>
      %75 = vector.shape_cast %73 : vector<1x16xi1> to vector<1x16xi1>
      %76 = vector.broadcast %75 : vector<1x16xi1> to vector<8x16xi1>
      %77 = arith.select %76, %2, %74 : vector<8x16xi1>, vector<8x16xf32>
      %cst_25 = arith.constant dense<0.000000e+00> : vector<16xf32>
      %78 = vector.multi_reduction <add>, %77, %cst_25 [0] : vector<8x16xf32> to vector<16xf32>
      %79 = vector.shape_cast %78 : vector<16xf32> to vector<1x16xf32>
      %cst_26 = arith.constant 8.000000e+00 : f32
      %80 = vector.broadcast %cst_26 : f32 to vector<1x16xf32>
      %81 = arith.divf %79, %80 : vector<1x16xf32>
      %82 = vector.broadcast %81 : vector<1x16xf32> to vector<8x16xf32>
      %83 = arith.subf %77, %82 : vector<8x16xf32>
      %84 = arith.mulf %83, %83 : vector<8x16xf32>
      %cst_27 = arith.constant dense<0.000000e+00> : vector<16xf32>
      %85 = vector.multi_reduction <add>, %84, %cst_27 [0] : vector<8x16xf32> to vector<16xf32>
      %86 = vector.shape_cast %85 : vector<16xf32> to vector<1x16xf32>
      %cst_28 = arith.constant 0.142857149 : f32
      %87 = vector.broadcast %cst_28 : f32 to vector<1x16xf32>
      %88 = arith.mulf %86, %87 : vector<1x16xf32>
      %89 = math.rsqrt %88 : vector<1x16xf32>
      %90 = vector.broadcast %89 : vector<1x16xf32> to vector<8x16xf32>
      %91 = arith.mulf %83, %90 : vector<8x16xf32>
      %c0_29 = arith.constant 0 : index
      %c0_30 = arith.constant 0 : index
      %92 = vector.load %arg4[%c0_29, %c0_30] : memref<8x16xf32, #tpu.memory_space<vmem>>, vector<8x16xf32>
      tpu.vector_store %arg4[%c0_29, %c0_30], %91 {strides = array<i32>} : memref<8x16xf32, #tpu.memory_space<vmem>>, vector<8x16xf32>,
    } else {
    }
    return
  }
  func.func @transform_0(%arg0: i32, %arg1: memref<1xi32, #tpu.memory_space<smem>>) -> (i32, i32) {
    %c0_i32 = arith.constant 0 : i32
    %c0_i32_0 = arith.constant 0 : i32
    return %c0_i32, %arg0 : i32, i32
  }
  func.func @transform_1(%arg0: i32, %arg1: memref<1xi32, #tpu.memory_space<smem>>) -> (i32, i32) {
    %c0_i32 = arith.constant 0 : i32
    %c0_i32_0 = arith.constant 0 : i32
    return %c0_i32, %arg0 : i32, i32
  }
  func.func @transform_2(%arg0: i32, %arg1: memref<1xi32, #tpu.memory_space<smem>>) -> (i32, i32) {
    %c0_i32 = arith.constant 0 : i32
    %c0_i32_0 = arith.constant 0 : i32
    return %c0_i32, %arg0 : i32, i32
  }
}

</mosaic_0001>

<bundles_post_ra>
// kernel: tpu_custom_call.1
= control target key start
LH: loop header
LB: loop body
LE: loop exit
PB: predicated region body
PF: predicated region fallthrough
CT: control target
= control target key end

     0   :  { %9 = vsyncpa [#allocation5], 0  ;;  %s786_s0 = inlined_call_operand.<no memory space> [shape: s32[1], index: 0, kind: input, shape index: {}]   ;;  %s787_s1 = inlined_call_operand.vmem [shape: s32[1,16], index: 1, kind: input, shape index: {}]   ;;  %s788_s2 = inlined_call_operand.hbm [shape: f32[8,16], index: 2, kind: input, shape index: {}]   ;;  %s789_s3 = inlined_call_operand.hbm [shape: f32[8,16], index: 3, kind: output, shape index: {}]  }
   0x1   :  { %10 = vsyncpa [#allocation6], 0  ;;  %s18_s14 = sshll.u32 %s788_s2, 4  ;;  %s658_s15 = smov [#allocation4]   ;;  %s19_s14 = int_to_ptr.hbm [resolvable:$true] %s18_s14 }
   0x2   :  { %s20_s16 = sshll.u32 %s658_s15, 4  ;;  %s21_s16 = int_to_ptr.vmem [resolvable:$true] %s20_s16 }
   0x3   :  { %23 = dma.hbm_to_vmem [thread:$0]  %s19_s14, 128, %s21_s16, [#allocation5]  }
   0x4   :  { %654 = dma.done.wait [#allocation5], 128  }
   0x5   :  { %655 = vsyncadd [#allocation5], 4294967168  ;;  %v692_v0 = vld [vmem:[#allocation4] sm:$0xff]  ;;  %p527_p0 = scmp.ne.s32.totalorder %s786_s0, 0 }
   0x7   :  { %33 = sbr.rel (%p527_p0) target bundleno = 71 (0x47), region = 17 }
   0xc   :  { %vm34_vm0 = vcmask 130048   ;;  %v659_v2 = vmov 8.0  }
   0xd   :  { %v35_v1 = vsel %vm34_vm0, %v692_v0, 0.0  ;;  %552 = vrcp.f32 %v659_v2 }
   0xe   :  { %v36_v3 = vrot.slane %v35_v1, 4 }
  0x10   :  { %v37_v4 = vadd.f32 %v36_v3, %v35_v1 }
  0x12   :  { %v38_v5 = vrot.slane %v37_v4, 2 }
  0x13   :  { %v553_v6 = vpop.eup %552 }
  0x14   :  { %v39_v7 = vadd.f32 %v38_v5, %v37_v4  ;;  %v43_v8 = vmul.f32 8.0, %v553_v6  ;;  %vm47_vm1 = vweird.f32 %v553_v6 }
  0x16   :  { %v40_v9 = vrot.slane %v39_v7, 1  ;;  %v44_v10 = vsub.f32 1.0, %v43_v8 }
  0x18   :  { %v45_v11 = vmul.f32 %v553_v6, %v44_v10  ;;  %v41_v12 = vadd.f32 %v40_v9, %v39_v7 }
  0x1a   :  { %v46_v13 = vadd.f32 %v553_v6, %v45_v11 }
  0x1c   :  { %v48_v14 = vsel %vm47_vm1, %v553_v6, %v46_v13 }
  0x1d   :  { %v49_v15 = vmul.f32 %v48_v14, %v41_v12 }
  0x1f   :  { %v50_v16 = vsub.f32 %v692_v0, %v49_v15 }
  0x21   :  { %v51_v17 = vmul.f32 %v50_v16, %v50_v16 }
  0x23   :  { %v52_v18 = vsel %vm34_vm0, %v51_v17, 0.0 }
  0x24   :  { %v53_v19 = vrot.slane %v52_v18, 4 }
  0x26   :  { %v54_v20 = vadd.f32 %v53_v19, %v52_v18 }
  0x28   :  { %v55_v21 = vrot.slane %v54_v20, 2 }
  0x2a   :  { %v56_v22 = vadd.f32 %v55_v21, %v54_v20 }
  0x2c   :  { %v57_v23 = vrot.slane %v56_v22, 1 }
  0x2e   :  { %v58_v24 = vadd.f32 %v57_v23, %v56_v22 }
  0x30   :  { %v59_v25 = vmul.f32 0.14285715, %v58_v24 }
  0x32   :  { %554 = vrsqrt.f32 %v59_v25  ;;  %vm66_vm2 = vweird.f32 %v59_v25 }
  0x38   :  { %v555_v26 = vpop.eup %554 }
  0x39   :  { %v61_v27 = vmul.f32 %v555_v26, %v59_v25  ;;  %vm67_vm3 = vweird.f32 %v555_v26 }
  0x3a   :  { %vm68_vm4 = vmor %vm66_vm2, %vm67_vm3 }
  0x3b   :  { %v62_v28 = vmul.f32 %v555_v26, %v61_v27 }
  0x3d   :  { %v63_v29 = vmul.f32 0.5, %v62_v28 }
  0x3f   :  { %v64_v30 = vsub.f32 1.5, %v63_v29 }
  0x41   :  { %v65_v31 = vmul.f32 %v555_v26, %v64_v30 }
  0x43   :  { %v69_v32 = vsel %vm68_vm4, %v555_v26, %v65_v31 }
  0x44   :  { %v70_v33 = vmul.f32 %v69_v32, %v50_v16 }
  0x46   :  { %71 = vst.msk [vmem:[#allocation7] sm:$0xff] %vm34_vm0, %v70_v33 }
  0x47 PF:  { %p528_p1 = scmp.ne.s32.totalorder %s786_s0, 1 }
  0x49   :  { %75 = sbr.rel (%p528_p1) target bundleno = 155 (0x9b), region = 21 }
  0x4e   :  { %v76_v34 = vmul.f32 1.442695, %v692_v0  ;;  %v660_v35 = vmov 8.0   ;;  %vm82_vm5 = vcmask 130048  }
  0x50   :  { %556 = vpow2.f32 %v76_v34 }
  0x51   :  { %558 = vrcp.f32 %v660_v35 }
  0x56   :  { %v557_v36 = vpop.eup %556 }
  0x57   :  { %v529_v37 = vadd.f32 -1.0, %v557_v36  ;;  %v559_v39 = vpop.eup %558 }
  0x58   :  { %v91_v40 = vmul.f32 8.0, %v559_v39  ;;  %vm95_vm6 = vweird.f32 %v559_v39 }
  0x59   :  { %v79_v38 = vadd.f32 1e-06, %v529_v37 }
  0x5a   :  { %v92_v43 = vsub.f32 1.0, %v91_v40 }
  0x5b   :  { %560 = vlog2.f32 %v79_v38 }
  0x5c   :  { %v93_v46 = vmul.f32 %v559_v39, %v92_v43 }
  0x5e   :  { %v94_v49 = vadd.f32 %v559_v39, %v93_v46 }
  0x60   :  { %v96_v52 = vsel %vm95_vm6, %v559_v39, %v94_v49 }
  0x61   :  { %v561_v41 = vpop.eup %560 }
  0x62   :  { %v81_v42 = vmul.f32 0.6931472, %v561_v41 }
  0x64   :  { %v83_v44 = vsel %vm82_vm5, %v81_v42, 0.0 }
  0x65   :  { %v84_v45 = vrot.slane %v83_v44, 4 }
  0x67   :  { %v85_v47 = vadd.f32 %v84_v45, %v83_v44 }
  0x69   :  { %v86_v48 = vrot.slane %v85_v47, 2 }
  0x6b   :  { %v87_v50 = vadd.f32 %v86_v48, %v85_v47 }
  0x6d   :  { %v88_v51 = vrot.slane %v87_v50, 1 }
  0x6f   :  { %v89_v53 = vadd.f32 %v88_v51, %v87_v50 }
  0x71   :  { %v97_v54 = vmul.f32 %v96_v52, %v89_v53 }
  0x73   :  { %v98_v55 = vsub.f32 %v81_v42, %v97_v54 }
  0x75   :  { %v99_v56 = vmul.f32 %v98_v55, %v98_v55 }
  0x77   :  { %v100_v57 = vsel %vm82_vm5, %v99_v56, 0.0 }
  0x78   :  { %v101_v58 = vrot.slane %v100_v57, 4 }
  0x7a   :  { %v102_v59 = vadd.f32 %v101_v58, %v100_v57 }
  0x7c   :  { %v103_v60 = vrot.slane %v102_v59, 2 }
  0x7e   :  { %v104_v61 = vadd.f32 %v103_v60, %v102_v59 }
  0x80   :  { %v105_v62 = vrot.slane %v104_v61, 1 }
  0x82   :  { %v106_v63 = vadd.f32 %v105_v62, %v104_v61 }
  0x84   :  { %v107_v1 = vmul.f32 0.14285715, %v106_v63 }
  0x86   :  { %562 = vrsqrt.f32 %v107_v1  ;;  %vm114_vm7 = vweird.f32 %v107_v1 }
  0x8c   :  { %v563_v2 = vpop.eup %562 }
  0x8d   :  { %v109_v3 = vmul.f32 %v563_v2, %v107_v1  ;;  %vm115_vm8 = vweird.f32 %v563_v2 }
  0x8e   :  { %vm116_vm9 = vmor %vm114_vm7, %vm115_vm8 }
  0x8f   :  { %v110_v4 = vmul.f32 %v563_v2, %v109_v3 }
  0x91   :  { %v111_v5 = vmul.f32 0.5, %v110_v4 }
  0x93   :  { %v112_v6 = vsub.f32 1.5, %v111_v5 }
  0x95   :  { %v113_v7 = vmul.f32 %v563_v2, %v112_v6 }
  0x97   :  { %v117_v8 = vsel %vm116_vm9, %v563_v2, %v113_v7 }
  0x98   :  { %v118_v9 = vmul.f32 %v117_v8, %v98_v55 }
  0x9a   :  { %119 = vst.msk [vmem:[#allocation7] sm:$0xff] %vm82_vm5, %v118_v9 }
  0x9b PF:  { %p530_p2 = scmp.ne.s32.totalorder %s786_s0, 2 }
  0x9d   :  { %123 = sbr.rel (%p530_p2) target bundleno = 241 (0xf1), region = 25 }
  0xa2   :  { %v124_v10 = vsub.f32 0.0, %v692_v0  ;;  %v661_v12 = vmov 8.0   ;;  %vm131_vm10 = vcmask 130048  }
  0xa4   :  { %v125_v11 = vmul.f32 1.442695, %v124_v10 }
  0xa6   :  { %564 = vpow2.f32 %v125_v11 }
  0xa7   :  { %566 = vrcp.f32 %v661_v12 }
  0xac   :  { %v565_v13 = vpop.eup %564 }
  0xad   :  { %v531_v14 = vadd.f32 -1.0, %v565_v13  ;;  %v567_v16 = vpop.eup %566 }
  0xae   :  { %v140_v17 = vmul.f32 8.0, %v567_v16  ;;  %vm144_vm11 = vweird.f32 %v567_v16 }
  0xaf   :  { %v128_v15 = vadd.f32 1e-06, %v531_v14 }
  0xb0   :  { %v141_v20 = vsub.f32 1.0, %v140_v17 }
  0xb1   :  { %568 = vlog2.f32 %v128_v15 }
  0xb2   :  { %v142_v23 = vmul.f32 %v567_v16, %v141_v20 }
  0xb4   :  { %v143_v26 = vadd.f32 %v567_v16, %v142_v23 }
  0xb6   :  { %v145_v29 = vsel %vm144_vm11, %v567_v16, %v143_v26 }
  0xb7   :  { %v569_v18 = vpop.eup %568 }
  0xb8   :  { %v130_v19 = vmul.f32 0.6931472, %v569_v18 }
  0xba   :  { %v132_v21 = vsel %vm131_vm10, %v130_v19, 0.0 }
  0xbb   :  { %v133_v22 = vrot.slane %v132_v21, 4 }
  0xbd   :  { %v134_v24 = vadd.f32 %v133_v22, %v132_v21 }
  0xbf   :  { %v135_v25 = vrot.slane %v134_v24, 2 }
  0xc1   :  { %v136_v27 = vadd.f32 %v135_v25, %v134_v24 }
  0xc3   :  { %v137_v28 = vrot.slane %v136_v27, 1 }
  0xc5   :  { %v138_v30 = vadd.f32 %v137_v28, %v136_v27 }
  0xc7   :  { %v146_v31 = vmul.f32 %v145_v29, %v138_v30 }
  0xc9   :  { %v147_v32 = vsub.f32 %v130_v19, %v146_v31 }
  0xcb   :  { %v148_v33 = vmul.f32 %v147_v32, %v147_v32 }
  0xcd   :  { %v149_v34 = vsel %vm131_vm10, %v148_v33, 0.0 }
  0xce   :  { %v150_v35 = vrot.slane %v149_v34, 4 }
  0xd0   :  { %v151_v36 = vadd.f32 %v150_v35, %v149_v34 }
  0xd2   :  { %v152_v37 = vrot.slane %v151_v36, 2 }
  0xd4   :  { %v153_v38 = vadd.f32 %v152_v37, %v151_v36 }
  0xd6   :  { %v154_v39 = vrot.slane %v153_v38, 1 }
  0xd8   :  { %v155_v40 = vadd.f32 %v154_v39, %v153_v38 }
  0xda   :  { %v156_v41 = vmul.f32 0.14285715, %v155_v40 }
  0xdc   :  { %570 = vrsqrt.f32 %v156_v41  ;;  %vm163_vm12 = vweird.f32 %v156_v41 }
  0xe2   :  { %v571_v42 = vpop.eup %570 }
  0xe3   :  { %v158_v43 = vmul.f32 %v571_v42, %v156_v41  ;;  %vm164_vm13 = vweird.f32 %v571_v42 }
  0xe4   :  { %vm165_vm14 = vmor %vm163_vm12, %vm164_vm13 }
  0xe5   :  { %v159_v44 = vmul.f32 %v571_v42, %v158_v43 }
  0xe7   :  { %v160_v45 = vmul.f32 0.5, %v159_v44 }
  0xe9   :  { %v161_v46 = vsub.f32 1.5, %v160_v45 }
  0xeb   :  { %v162_v47 = vmul.f32 %v571_v42, %v161_v46 }
  0xed   :  { %v166_v48 = vsel %vm165_vm14, %v571_v42, %v162_v47 }
  0xee   :  { %v167_v49 = vmul.f32 %v166_v48, %v147_v32 }
  0xf0   :  { %168 = vst.msk [vmem:[#allocation7] sm:$0xff] %vm131_vm10, %v167_v49 }
  0xf1 PF:  { %p532_p3 = scmp.ne.s32.totalorder %s786_s0, 3 }
  0xf3   :  { %172 = sbr.rel (%p532_p3) target bundleno = 314 (0x13a), region = 29 }
  0xf8   :  { %v173_v50 = vadd.f32 1e-06, %v692_v0  ;;  %v662_v51 = vmov 8.0   ;;  %vm176_vm15 = vcmask 130048  }
  0xf9   :  { %572 = vrcp.f32 %v662_v51 }
  0xfa   :  { %574 = vlog2.f32 %v173_v50 }
  0xff   :  { %v573_v52 = vpop.eup %572 }
 0x100   :  { %v575_v53 = vpop.eup %574  ;;  %v185_v54 = vmul.f32 8.0, %v573_v52  ;;  %vm189_vm0 = vweird.f32 %v573_v52 }
 0x101   :  { %v175_v55 = vmul.f32 0.6931472, %v575_v53 }
 0x102   :  { %v186_v56 = vsub.f32 1.0, %v185_v54 }
 0x103   :  { %v177_v57 = vsel %vm176_vm15, %v175_v55, 0.0 }
 0x104   :  { %v178_v58 = vrot.slane %v177_v57, 4  ;;  %v187_v59 = vmul.f32 %v573_v52, %v186_v56 }
 0x106   :  { %v179_v60 = vadd.f32 %v178_v58, %v177_v57  ;;  %v188_v62 = vadd.f32 %v573_v52, %v187_v59 }
 0x108   :  { %v180_v61 = vrot.slane %v179_v60, 2  ;;  %v190_v2 = vsel %vm189_vm0, %v573_v52, %v188_v62 }
 0x10a   :  { %v181_v63 = vadd.f32 %v180_v61, %v179_v60 }
 0x10c   :  { %v182_v1 = vrot.slane %v181_v63, 1 }
 0x10e   :  { %v183_v3 = vadd.f32 %v182_v1, %v181_v63 }
 0x110   :  { %v191_v4 = vmul.f32 %v190_v2, %v183_v3 }
 0x112   :  { %v192_v5 = vsub.f32 %v175_v55, %v191_v4 }
 0x114   :  { %v193_v6 = vmul.f32 %v192_v5, %v192_v5 }
 0x116   :  { %v194_v7 = vsel %vm176_vm15, %v193_v6, 0.0 }
 0x117   :  { %v195_v8 = vrot.slane %v194_v7, 4 }
 0x119   :  { %v196_v9 = vadd.f32 %v195_v8, %v194_v7 }
 0x11b   :  { %v197_v10 = vrot.slane %v196_v9, 2 }
 0x11d   :  { %v198_v11 = vadd.f32 %v197_v10, %v196_v9 }
 0x11f   :  { %v199_v12 = vrot.slane %v198_v11, 1 }
 0x121   :  { %v200_v13 = vadd.f32 %v199_v12, %v198_v11 }
 0x123   :  { %v201_v14 = vmul.f32 0.14285715, %v200_v13 }
 0x125   :  { %576 = vrsqrt.f32 %v201_v14  ;;  %vm208_vm1 = vweird.f32 %v201_v14 }
 0x12b   :  { %v577_v15 = vpop.eup %576 }
 0x12c   :  { %v203_v16 = vmul.f32 %v577_v15, %v201_v14  ;;  %vm209_vm2 = vweird.f32 %v577_v15 }
 0x12d   :  { %vm210_vm3 = vmor %vm208_vm1, %vm209_vm2 }
 0x12e   :  { %v204_v17 = vmul.f32 %v577_v15, %v203_v16 }
 0x130   :  { %v205_v18 = vmul.f32 0.5, %v204_v17 }
 0x132   :  { %v206_v19 = vsub.f32 1.5, %v205_v18 }
 0x134   :  { %v207_v20 = vmul.f32 %v577_v15, %v206_v19 }
 0x136   :  { %v211_v21 = vsel %vm210_vm3, %v577_v15, %v207_v20 }
 0x137   :  { %v212_v22 = vmul.f32 %v211_v21, %v192_v5 }
 0x139   :  { %213 = vst.msk [vmem:[#allocation7] sm:$0xff] %vm176_vm15, %v212_v22 }
 0x13a PF:  { %p533_p4 = scmp.ne.s32.totalorder %s786_s0, 4 }
 0x13c   :  { %217 = sbr.rel (%p533_p4) target bundleno = 422 (0x1a6), region = 33 }
 0x141   :  { %vm218_vm4 = vcmask 130048   ;;  %v663_v49 = vmov 8.0  }
 0x142   :  { %v219_v23 = vsel %vm218_vm4, %v692_v0, inf  ;;  %v227_v24 = vsel %vm218_vm4, %v692_v0, -inf }
 0x143   :  { %v220_v25 = vrot.slane %v219_v23, 4  ;;  %v228_v26 = vrot.slane %v227_v24, 4 }
 0x145   :  { %v229_v27 = vmax.f32 %v227_v24, %v228_v26  ;;  %v221_v28 = vmin.f32 %v219_v23, %v220_v25 }
 0x147   :  { %v230_v29 = vrot.slane %v229_v27, 2  ;;  %v222_v31 = vrot.slane %v221_v28, 2 }
 0x149   :  { %v231_v30 = vmax.f32 %v229_v27, %v230_v29  ;;  %v223_v34 = vmin.f32 %v221_v28, %v222_v31 }
 0x14b   :  { %v232_v32 = vrot.slane %v231_v30, 1  ;;  %v224_v37 = vrot.slane %v223_v34, 1 }
 0x14d   :  { %v233_v33 = vmax.f32 %v231_v30, %v232_v32  ;;  %v225_v38 = vmin.f32 %v223_v34, %v224_v37 }
 0x14f   :  { %v234_v35 = vadd.f32 1e-06, %v233_v33  ;;  %v534_v41 = vadd.f32 -1e-06, %v225_v38 }
 0x151   :  { %v236_v36 = vsub.f32 %v234_v35, %v692_v0  ;;  %v235_v47 = vsub.f32 %v692_v0, %v534_v41 }
 0x153   :  { %578 = vrcp.f32 %v236_v36  ;;  %v248_v42 = vand.u32 2147483648, %v236_v36  ;;  %vm242_vm5 = vweird.f32 %v236_v36  ;;  %v246_v44 = vand.u32 2147483647, %v236_v36 }
 0x154   :  { %580 = vrcp.f32 %v663_v49 }
 0x155   :  { %v249_v46 = vor.u32 1.1754944e-38, %v248_v42  ;;  %vm247_vm8 = vcmp.eq.f32.partialorder %v246_v44, 8.507059e+37 }
 0x159   :  { %v579_v39 = vpop.eup %578 }
 0x15a   :  { %v238_v40 = vmul.f32 %v579_v39, %v236_v36  ;;  %vm243_vm6 = vweird.f32 %v579_v39  ;;  %v581_v53 = vpop.eup %580 }
 0x15b   :  { %vm244_vm7 = vmor %vm242_vm5, %vm243_vm6  ;;  %v262_v54 = vmul.f32 8.0, %v581_v53  ;;  %vm266_vm9 = vweird.f32 %v581_v53 }
 0x15c   :  { %v239_v43 = vsub.f32 1.0, %v238_v40 }
 0x15d   :  { %v263_v57 = vsub.f32 1.0, %v262_v54 }
 0x15e   :  { %v240_v45 = vmul.f32 %v579_v39, %v239_v43 }
 0x15f   :  { %v264_v60 = vmul.f32 %v581_v53, %v263_v57 }
 0x160   :  { %v241_v48 = vadd.f32 %v579_v39, %v240_v45 }
 0x161   :  { %v265_v63 = vadd.f32 %v581_v53, %v264_v60 }
 0x162   :  { %v245_v50 = vsel %vm244_vm7, %v579_v39, %v241_v48 }
 0x163   :  { %v250_v51 = vsel %vm247_vm8, %v249_v46, %v245_v50  ;;  %v267_v3 = vsel %vm266_vm9, %v581_v53, %v265_v63 }
 0x164   :  { %v251_v52 = vmul.f32 %v250_v51, %v235_v47 }
 0x166   :  { %582 = vlog2.f32 %v251_v52 }
 0x16c   :  { %v583_v55 = vpop.eup %582 }
 0x16d   :  { %v253_v56 = vmul.f32 0.6931472, %v583_v55 }
 0x16f   :  { %v254_v58 = vsel %vm218_vm4, %v253_v56, 0.0 }
 0x170   :  { %v255_v59 = vrot.slane %v254_v58, 4 }
 0x172   :  { %v256_v61 = vadd.f32 %v255_v59, %v254_v58 }
 0x174   :  { %v257_v62 = vrot.slane %v256_v61, 2 }
 0x176   :  { %v258_v1 = vadd.f32 %v257_v62, %v256_v61 }
 0x178   :  { %v259_v2 = vrot.slane %v258_v1, 1 }
 0x17a   :  { %v260_v4 = vadd.f32 %v259_v2, %v258_v1 }
 0x17c   :  { %v268_v5 = vmul.f32 %v267_v3, %v260_v4 }
 0x17e   :  { %v269_v6 = vsub.f32 %v253_v56, %v268_v5 }
 0x180   :  { %v270_v7 = vmul.f32 %v269_v6, %v269_v6 }
 0x182   :  { %v271_v8 = vsel %vm218_vm4, %v270_v7, 0.0 }
 0x183   :  { %v272_v9 = vrot.slane %v271_v8, 4 }
 0x185   :  { %v273_v10 = vadd.f32 %v272_v9, %v271_v8 }
 0x187   :  { %v274_v11 = vrot.slane %v273_v10, 2 }
 0x189   :  { %v275_v12 = vadd.f32 %v274_v11, %v273_v10 }
 0x18b   :  { %v276_v13 = vrot.slane %v275_v12, 1 }
 0x18d   :  { %v277_v14 = vadd.f32 %v276_v13, %v275_v12 }
 0x18f   :  { %v278_v15 = vmul.f32 0.14285715, %v277_v14 }
 0x191   :  { %584 = vrsqrt.f32 %v278_v15  ;;  %vm285_vm10 = vweird.f32 %v278_v15 }
 0x197   :  { %v585_v16 = vpop.eup %584 }
 0x198   :  { %v280_v17 = vmul.f32 %v585_v16, %v278_v15  ;;  %vm286_vm11 = vweird.f32 %v585_v16 }
 0x199   :  { %vm287_vm12 = vmor %vm285_vm10, %vm286_vm11 }
 0x19a   :  { %v281_v18 = vmul.f32 %v585_v16, %v280_v17 }
 0x19c   :  { %v282_v19 = vmul.f32 0.5, %v281_v18 }
 0x19e   :  { %v283_v20 = vsub.f32 1.5, %v282_v19 }
 0x1a0   :  { %v284_v21 = vmul.f32 %v585_v16, %v283_v20 }
 0x1a2   :  { %v288_v22 = vsel %vm287_vm12, %v585_v16, %v284_v21 }
 0x1a3   :  { %v289_v23 = vmul.f32 %v288_v22, %v269_v6 }
 0x1a5   :  { %290 = vst.msk [vmem:[#allocation7] sm:$0xff] %vm218_vm4, %v289_v23 }
 0x1a6 PF:  { %p535_p5 = scmp.ne.s32.totalorder %s786_s0, 5 }
 0x1a8   :  { %294 = sbr.rel (%p535_p5) target bundleno = 532 (0x214), region = 37 }
 0x1ad   :  { %vm296_vm13 = vcmask 130048   ;;  %v295_v38 = vld [vmem:[%s787_s1] sm:$0x1]  ;;  %v664_v41 = vmov 0   ;;  %v314_v52 = vadd.f32 1e-06, %v692_v0 }
 0x1ae   :  { %v297_v24 = vsel %vm296_vm13, %v692_v0, inf  ;;  %v305_v25 = vsel %vm296_vm13, %v692_v0, -inf  ;;  %vm313_vm14 = vcmp.eq.s32.totalorder %v295_v38, 3  ;;  %vm319_vm15 = vcmp.eq.s32.totalorder %v295_v38, 4 }
 0x1af   :  { %v298_v26 = vrot.slane %v297_v24, 4  ;;  %v306_v27 = vrot.slane %v305_v25, 4  ;;  %v315_v42 = vsel %vm313_vm14, 1, %v664_v41  ;;  %v337_v48 = vsel %vm319_vm15, 1, %v664_v41 }
 0x1b0   :  { %v316_v46 = vperm.slane %v315_v42, 0  ;;  %v338_v54 = vperm.slane %v337_v48, 0  ;;  %v665_v58 = vmov 8.0   ;;  %vm341_vm6 = vcmp.eq.s32.totalorder %v295_v38, 0 }
 0x1b1   :  { %v307_v28 = vmax.f32 %v305_v25, %v306_v27  ;;  %v299_v29 = vmin.f32 %v297_v24, %v298_v26  ;;  %v344_v63 = vsel %vm341_vm6, 1, %v664_v41 }
 0x1b2   :  { %vm317_vm3 = vcmp.eq.s32.totalorder %v316_v46, 1  ;;  %vm339_vm5 = vcmp.eq.s32.totalorder %v338_v54, 1  ;;  %v345_v2 = vperm.slane %v344_v63, 0 }
 0x1b3   :  { %v308_v30 = vrot.slane %v307_v28, 2  ;;  %v300_v32 = vrot.slane %v299_v29, 2  ;;  %v318_v59 = vsel %vm317_vm3, %v314_v52, 1.0 }
 0x1b4   :  { %vm346_vm7 = vcmp.eq.s32.totalorder %v345_v2, 1 }
 0x1b5   :  { %v309_v31 = vmax.f32 %v307_v28, %v308_v30  ;;  %v301_v35 = vmin.f32 %v299_v29, %v300_v32 }
 0x1b7   :  { %v310_v33 = vrot.slane %v309_v31, 1  ;;  %v302_v39 = vrot.slane %v301_v35, 1 }
 0x1b9   :  { %v311_v34 = vmax.f32 %v309_v31, %v310_v33  ;;  %v303_v40 = vmin.f32 %v301_v35, %v302_v39 }
 0x1bb   :  { %v312_v36 = vadd.f32 1e-06, %v311_v34  ;;  %v536_v45 = vadd.f32 -1e-06, %v303_v40 }
 0x1bd   :  { %v321_v37 = vsub.f32 %v312_v36, %v692_v0  ;;  %v320_v55 = vsub.f32 %v692_v0, %v536_v45 }
 0x1bf   :  { %586 = vrcp.f32 %v321_v37  ;;  %v333_v47 = vand.u32 2147483648, %v321_v37  ;;  %vm327_vm0 = vweird.f32 %v321_v37  ;;  %v331_v50 = vand.u32 2147483647, %v321_v37 }
 0x1c0   :  { %588 = vrcp.f32 %v665_v58 }
 0x1c1   :  { %v334_v53 = vor.u32 1.1754944e-38, %v333_v47  ;;  %vm332_vm4 = vcmp.eq.f32.partialorder %v331_v50, 8.507059e+37 }
 0x1c5   :  { %v587_v43 = vpop.eup %586 }
 0x1c6   :  { %v323_v44 = vmul.f32 %v587_v43, %v321_v37  ;;  %vm328_vm1 = vweird.f32 %v587_v43  ;;  %v589_v1 = vpop.eup %588 }
 0x1c7   :  { %vm329_vm2 = vmor %vm327_vm0, %vm328_vm1  ;;  %v356_v3 = vmul.f32 8.0, %v589_v1  ;;  %vm360_vm8 = vweird.f32 %v589_v1 }
 0x1c8   :  { %v324_v49 = vsub.f32 1.0, %v323_v44 }
 0x1c9   :  { %v357_v6 = vsub.f32 1.0, %v356_v3 }
 0x1ca   :  { %v325_v51 = vmul.f32 %v587_v43, %v324_v49 }
 0x1cb   :  { %v358_v10 = vmul.f32 %v589_v1, %v357_v6 }
 0x1cc   :  { %v326_v56 = vadd.f32 %v587_v43, %v325_v51 }
 0x1cd   :  { %v359_v13 = vadd.f32 %v589_v1, %v358_v10 }
 0x1ce   :  { %v330_v57 = vsel %vm329_vm2, %v587_v43, %v326_v56 }
 0x1cf   :  { %v335_v60 = vsel %vm332_vm4, %v334_v53, %v330_v57  ;;  %v361_v16 = vsel %vm360_vm8, %v589_v1, %v359_v13 }
 0x1d0   :  { %v336_v61 = vmul.f32 %v335_v60, %v320_v55 }
 0x1d2   :  { %v340_v62 = vsel %vm339_vm5, %v336_v61, %v318_v59 }
 0x1d3   :  { %590 = vlog2.f32 %v340_v62 }
 0x1d9   :  { %v591_v4 = vpop.eup %590 }
 0x1da   :  { %v343_v5 = vmul.f32 0.6931472, %v591_v4 }
 0x1dc   :  { %v347_v7 = vsel %vm346_vm7, %v692_v0, %v343_v5 }
 0x1dd   :  { %v348_v8 = vsel %vm296_vm13, %v347_v7, 0.0 }
 0x1de   :  { %v349_v9 = vrot.slane %v348_v8, 4 }
 0x1e0   :  { %v350_v11 = vadd.f32 %v349_v9, %v348_v8 }
 0x1e2   :  { %v351_v12 = vrot.slane %v350_v11, 2 }
 0x1e4   :  { %v352_v14 = vadd.f32 %v351_v12, %v350_v11 }
 0x1e6   :  { %v353_v15 = vrot.slane %v352_v14, 1 }
 0x1e8   :  { %v354_v17 = vadd.f32 %v353_v15, %v352_v14 }
 0x1ea   :  { %v362_v18 = vmul.f32 %v361_v16, %v354_v17 }
 0x1ec   :  { %v363_v19 = vsub.f32 %v347_v7, %v362_v18 }
 0x1ee   :  { %v364_v20 = vmul.f32 %v363_v19, %v363_v19 }
 0x1f0   :  { %v365_v21 = vsel %vm296_vm13, %v364_v20, 0.0 }
 0x1f1   :  { %v366_v22 = vrot.slane %v365_v21, 4 }
 0x1f3   :  { %v367_v23 = vadd.f32 %v366_v22, %v365_v21 }
 0x1f5   :  { %v368_v24 = vrot.slane %v367_v23, 2 }
 0x1f7   :  { %v369_v25 = vadd.f32 %v368_v24, %v367_v23 }
 0x1f9   :  { %v370_v26 = vrot.slane %v369_v25, 1 }
 0x1fb   :  { %v371_v27 = vadd.f32 %v370_v26, %v369_v25 }
 0x1fd   :  { %v372_v28 = vmul.f32 0.14285715, %v371_v27 }
 0x1ff   :  { %592 = vrsqrt.f32 %v372_v28  ;;  %vm379_vm9 = vweird.f32 %v372_v28 }
 0x205   :  { %v593_v29 = vpop.eup %592 }
 0x206   :  { %v374_v30 = vmul.f32 %v593_v29, %v372_v28  ;;  %vm380_vm10 = vweird.f32 %v593_v29 }
 0x207   :  { %vm381_vm11 = vmor %vm379_vm9, %vm380_vm10 }
 0x208   :  { %v375_v31 = vmul.f32 %v593_v29, %v374_v30 }
 0x20a   :  { %v376_v32 = vmul.f32 0.5, %v375_v31 }
 0x20c   :  { %v377_v33 = vsub.f32 1.5, %v376_v32 }
 0x20e   :  { %v378_v34 = vmul.f32 %v593_v29, %v377_v33 }
 0x210   :  { %v382_v35 = vsel %vm381_vm11, %v593_v29, %v378_v34 }
 0x211   :  { %v383_v36 = vmul.f32 %v382_v35, %v363_v19 }
 0x213   :  { %384 = vst.msk [vmem:[#allocation7] sm:$0xff] %vm296_vm13, %v383_v36 }
 0x214 PF:  { %p537_p6 = scmp.ne.s32.totalorder %s786_s0, 6 }
 0x216   :  { %388 = sbr.rel (%p537_p6) target bundleno = 644 (0x284), region = 41 }
 0x21b   :  { %vm390_vm12 = vcmask 130048   ;;  %v435_v41 = vmul.f32 1.442695, %v692_v0  ;;  %v763_v50 = vld [vmem:[%s787_s1] sm:$0x1]  ;;  %v666_v57 = vmov 0  }
 0x21c   :  { %v391_v37 = vsel %vm390_vm12, %v692_v0, inf  ;;  %v399_v38 = vsel %vm390_vm12, %v692_v0, -inf  ;;  %vm407_vm13 = vcmp.eq.s32.totalorder %v763_v50, 3  ;;  %vm413_vm14 = vcmp.eq.s32.totalorder %v763_v50, 4 }
 0x21d   :  { %v392_v39 = vrot.slane %v391_v37, 4  ;;  %v400_v40 = vrot.slane %v399_v38, 4  ;;  %594 = vpow2.f32 %v435_v41  ;;  %v409_v58 = vsel %vm407_vm13, 1, %v666_v57 }
 0x21e   :  { %vm437_vm1 = vcmp.eq.s32.totalorder %v763_v50, 1  ;;  %v410_v2 = vperm.slane %v409_v58, 0  ;;  %v431_v3 = vsel %vm413_vm14, 1, %v666_v57  ;;  %vm444_vm5 = vcmp.eq.s32.totalorder %v763_v50, 2 }
 0x21f   :  { %v401_v42 = vmax.f32 %v399_v38, %v400_v40  ;;  %v393_v43 = vmin.f32 %v391_v37, %v392_v39  ;;  %v440_v6 = vsel %vm437_vm1, 1, %v666_v57  ;;  %v408_v14 = vadd.f32 1e-06, %v692_v0 }
 0x220   :  { %v432_v16 = vperm.slane %v431_v3, 0  ;;  %v462_v17 = vsel %vm444_vm5, 1, %v666_v57  ;;  %vm771_vm7 = vcmp.eq.s32.totalorder %v410_v2, 1  ;;  %v441_v21 = vperm.slane %v440_v6, 0 }
 0x221   :  { %v402_v44 = vrot.slane %v401_v42, 2  ;;  %v394_v46 = vrot.slane %v393_v43, 2  ;;  %v463_v25 = vperm.slane %v462_v17, 0  ;;  %v412_v27 = vsel %vm771_vm7, %v408_v14, 1.0 }
 0x222   :  { %vm433_vm10 = vcmp.eq.s32.totalorder %v432_v16, 1  ;;  %vm442_vm11 = vcmp.eq.s32.totalorder %v441_v21, 1  ;;  %v667_v32 = vmov 8.0   ;;  %vm466_vm14 = vcmp.eq.s32.totalorder %v763_v50, 0 }
 0x223   :  { %v403_v45 = vmax.f32 %v401_v42, %v402_v44  ;;  %v595_v48 = vpop.eup %594  ;;  %v395_v51 = vmin.f32 %v393_v43, %v394_v46  ;;  %vm464_vm13 = vcmp.eq.s32.totalorder %v463_v25, 1  ;;  %v469_v36 = vsel %vm466_vm14, 1, %v666_v57 }
 0x224   :  { %596 = vrcp.f32 %v595_v48  ;;  %v456_v59 = vand.u32 2147483648, %v595_v48  ;;  %vm450_vm15 = vweird.f32 %v595_v48  ;;  %v454_v61 = vand.u32 2147483647, %v595_v48 }
 0x225   :  { %v404_v47 = vrot.slane %v403_v45, 1  ;;  %v396_v55 = vrot.slane %v395_v51, 1  ;;  %v539_v20 = vadd.f32 -1.0, %v595_v48  ;;  %v470_v38 = vperm.slane %v469_v36, 0 }
 0x226   :  { %v457_v4 = vor.u32 1.1754944e-38, %v456_v59  ;;  %vm455_vm3 = vcmp.eq.f32.partialorder %v454_v61, 8.507059e+37 }
 0x227   :  { %v405_v49 = vmax.f32 %v403_v45, %v404_v47  ;;  %v397_v62 = vmin.f32 %v395_v51, %v396_v55  ;;  %v439_v29 = vadd.f32 1e-06, %v539_v20 }
 0x229   :  { %v406_v52 = vadd.f32 1e-06, %v405_v49  ;;  %v538_v8 = vadd.f32 -1e-06, %v397_v62 }
 0x22a   :  { %v597_v54 = vpop.eup %596 }
 0x22b   :  { %v415_v53 = vsub.f32 %v406_v52, %v692_v0  ;;  %v446_v56 = vmul.f32 %v597_v54, %v595_v48  ;;  %vm451_vm0 = vweird.f32 %v597_v54  ;;  %v414_v22 = vsub.f32 %v692_v0, %v538_v8 }
 0x22c   :  { %vm452_vm2 = vmor %vm450_vm15, %vm451_vm0  ;;  %vm471_vm15 = vcmp.eq.s32.totalorder %v470_v38, 1 }
 0x22d   :  { %598 = vrcp.f32 %v415_v53  ;;  %v447_v60 = vsub.f32 1.0, %v446_v56  ;;  %vm421_vm4 = vweird.f32 %v415_v53  ;;  %v427_v9 = vand.u32 2147483648, %v415_v53 }
 0x22e   :  { %v425_v11 = vand.u32 2147483647, %v415_v53  ;;  %600 = vrcp.f32 %v667_v32 }
 0x22f   :  { %v448_v63 = vmul.f32 %v597_v54, %v447_v60  ;;  %v428_v19 = vor.u32 1.1754944e-38, %v427_v9 }
 0x230   :  { %vm426_vm9 = vcmp.eq.f32.partialorder %v425_v11, 8.507059e+37 }
 0x231   :  { %v449_v7 = vadd.f32 %v597_v54, %v448_v63 }
 0x233   :  { %v599_v1 = vpop.eup %598  ;;  %v453_v12 = vsel %vm452_vm2, %v597_v54, %v449_v7 }
 0x234   :  { %v417_v5 = vmul.f32 %v599_v1, %v415_v53  ;;  %vm422_vm6 = vweird.f32 %v599_v1  ;;  %v458_v13 = vsel %vm455_vm3, %v457_v4, %v453_v12  ;;  %v601_v37 = vpop.eup %600 }
 0x235   :  { %vm423_vm8 = vmor %vm421_vm4, %vm422_vm6  ;;  %v540_v24 = vadd.f32 -1.0, %v458_v13  ;;  %v481_v39 = vmul.f32 8.0, %v601_v37  ;;  %vm485_vm0 = vweird.f32 %v601_v37 }
 0x236   :  { %v418_v10 = vsub.f32 1.0, %v417_v5 }
 0x237   :  { %v461_v31 = vadd.f32 1e-06, %v540_v24  ;;  %v482_v42 = vsub.f32 1.0, %v481_v39 }
 0x238   :  { %v419_v15 = vmul.f32 %v599_v1, %v418_v10 }
 0x239   :  { %v483_v46 = vmul.f32 %v601_v37, %v482_v42 }
 0x23a   :  { %v420_v23 = vadd.f32 %v599_v1, %v419_v15 }
 0x23b   :  { %v484_v49 = vadd.f32 %v601_v37, %v483_v46 }
 0x23c   :  { %v424_v26 = vsel %vm423_vm8, %v599_v1, %v420_v23 }
 0x23d   :  { %v429_v28 = vsel %vm426_vm9, %v428_v19, %v424_v26  ;;  %v486_v52 = vsel %vm485_vm0, %v601_v37, %v484_v49 }
 0x23e   :  { %v430_v30 = vmul.f32 %v429_v28, %v414_v22 }
 0x240   :  { %v434_v33 = vsel %vm433_vm10, %v430_v30, %v412_v27 }
 0x241   :  { %v443_v34 = vsel %vm442_vm11, %v439_v29, %v434_v33 }
 0x242   :  { %v465_v35 = vsel %vm464_vm13, %v461_v31, %v443_v34 }
 0x243   :  { %602 = vlog2.f32 %v465_v35 }
 0x249   :  { %v603_v40 = vpop.eup %602 }
 0x24a   :  { %v468_v41 = vmul.f32 0.6931472, %v603_v40 }
 0x24c   :  { %v472_v43 = vsel %vm471_vm15, %v692_v0, %v468_v41 }
 0x24d   :  { %v473_v44 = vsel %vm390_vm12, %v472_v43, 0.0 }
 0x24e   :  { %v474_v45 = vrot.slane %v473_v44, 4 }
 0x250   :  { %v475_v47 = vadd.f32 %v474_v45, %v473_v44 }
 0x252   :  { %v476_v48 = vrot.slane %v475_v47, 2 }
 0x254   :  { %v477_v50 = vadd.f32 %v476_v48, %v475_v47 }
 0x256   :  { %v478_v51 = vrot.slane %v477_v50, 1 }
 0x258   :  { %v479_v53 = vadd.f32 %v478_v51, %v477_v50 }
 0x25a   :  { %v487_v54 = vmul.f32 %v486_v52, %v479_v53 }
 0x25c   :  { %v488_v55 = vsub.f32 %v472_v43, %v487_v54 }
 0x25e   :  { %v489_v56 = vmul.f32 %v488_v55, %v488_v55 }
 0x260   :  { %v490_v57 = vsel %vm390_vm12, %v489_v56, 0.0 }
 0x261   :  { %v491_v58 = vrot.slane %v490_v57, 4 }
 0x263   :  { %v492_v59 = vadd.f32 %v491_v58, %v490_v57 }
 0x265   :  { %v493_v0 = vrot.slane %v492_v59, 2 }
 0x267   :  { %v494_v60 = vadd.f32 %v493_v0, %v492_v59 }
 0x269   :  { %v495_v61 = vrot.slane %v494_v60, 1 }
 0x26b   :  { %v496_v62 = vadd.f32 %v495_v61, %v494_v60 }
 0x26d   :  { %v497_v63 = vmul.f32 0.14285715, %v496_v62 }
 0x26f   :  { %604 = vrsqrt.f32 %v497_v63  ;;  %vm504_vm1 = vweird.f32 %v497_v63 }
 0x275   :  { %v605_v1 = vpop.eup %604 }
 0x276   :  { %v499_v2 = vmul.f32 %v605_v1, %v497_v63  ;;  %vm505_vm2 = vweird.f32 %v605_v1 }
 0x277   :  { %vm506_vm3 = vmor %vm504_vm1, %vm505_vm2 }
 0x278   :  { %v500_v3 = vmul.f32 %v605_v1, %v499_v2 }
 0x27a   :  { %v501_v4 = vmul.f32 0.5, %v500_v3 }
 0x27c   :  { %v502_v5 = vsub.f32 1.5, %v501_v4 }
 0x27e   :  { %v503_v6 = vmul.f32 %v605_v1, %v502_v5 }
 0x280   :  { %v507_v7 = vsel %vm506_vm3, %v605_v1, %v503_v6 }
 0x281   :  { %v508_v8 = vmul.f32 %v507_v7, %v488_v55 }
 0x283   :  { %509 = vst.msk [vmem:[#allocation7] sm:$0xff] %vm390_vm12, %v508_v8 }
 0x284 PF:  { %s517_s7 = sshll.u32 %s789_s3, 4  ;;  %s668_s8 = smov [#allocation7]   ;;  %s518_s7 = int_to_ptr.hbm [resolvable:$true] %s517_s7 }
 0x285   :  { %s515_s9 = sshll.u32 %s668_s8, 4  ;;  %s516_s9 = int_to_ptr.vmem [resolvable:$true] %s515_s9 }
 0x286   :  { %520 = dma.vmem_to_hbm [thread:$0]  %s516_s9, 128, %s518_s7, [#allocation6]  }
 0x287   :  { %656 = dma.done.wait [#allocation6], 128  }
 0x288   :  { %657 = vsyncadd [#allocation6], 4294967168 }
 0x289   :  { %525 = vsyncpa [#allocation5], 1 }
 0x28a   :  { %526 = vsyncpa [#allocation6], 1 }

</bundles_post_ra>
